<compile_context>
chip_gen: v7x
topology: tpu7x:2x2x1
jax: 0.10.0
libtpu: 0.0.40
codegen_flags: <defaults>
</compile_context>

<pallas_src>
import math

import jax
import jax.numpy as jnp
from jax.experimental import pallas as pl
from jax.experimental.pallas import tpu as pltpu


def _mlp_kernel(xT_ref, *refs):
    """Fused MLP on a transposed (features, batch_tile) layout.

    refs = (w0, b0, w1, b1, ..., wL-1, bL-1, out)
      wi : (out_i, in_i)  bf16   (PyTorch layout)
      bi : (out_i, 1)     f32
      out: (emb, tile_b)  f32
    Batch lives on the 128-lane axis -> lane-dense loads/stores.
    """
    out_ref = refs[-1]
    param_refs = refs[:-1]
    n_layers = len(param_refs) // 2

    h = xT_ref[...]                          # bf16 (in_dim, tile_b)
    for li in range(n_layers):               # static Python loop -> unrolled
        w = param_refs[2 * li][...]          # bf16 (out, in)
        b = param_refs[2 * li + 1][...]      # f32  (out, 1)
        z = jnp.dot(w, h, preferred_element_type=jnp.float32) + b   # MXU, f32 acc
        a = jax.nn.sigmoid(z)                # f32 on VPU/EUP
        if li < n_layers - 1:
            h = a.astype(jnp.bfloat16)       # bf16 operand for the next MXU pass
        else:
            h = a
    out_ref[...] = h.astype(out_ref.dtype)


def user_embedding_forward(x, params, *, tile_b=512):
    """Run the fused UserEmbedding MLP as a single pallas_call.

    x:      (B, in_dim) float32
    params: list of (W, b) in PyTorch layout, W: (d_out, d_in), b: (d_out,)
    returns (B, emb_dim) float32
    """
    B, in_dim = x.shape
    emb_dim = params[-1][0].shape[0]

    # Batch tile on the lane axis: multiple of 128, no larger than needed.
    tile_b = max(128, min(int(tile_b), pl.cdiv(B, 128) * 128))
    Bp = pl.cdiv(B, tile_b) * tile_b

    # Transpose + zero-pad batch, cast to bf16 (halves HBM read of the big operand).
    xT = jnp.zeros((in_dim, Bp), jnp.bfloat16).at[:, :B].set(
        x.astype(jnp.bfloat16).T)

    in_specs = [pl.BlockSpec((in_dim, tile_b), lambda i: (0, i))]
    flat_params = []
    for w, b in params:
        w_bf = w.astype(jnp.bfloat16)                 # resident, bf16 MXU operand
        b2 = b.reshape(-1, 1).astype(jnp.float32)     # (out, 1) f32, lane-broadcast
        in_specs.append(pl.BlockSpec(w_bf.shape, lambda i: (0, 0)))
        in_specs.append(pl.BlockSpec(b2.shape, lambda i: (0, 0)))
        flat_params.extend([w_bf, b2])

    out_specs = pl.BlockSpec((emb_dim, tile_b), lambda i: (0, i))

    # Advisory cost hint: tiny-matmul, DMA-bound kernel.
    flops, trans, last = 0, 0, in_dim
    for w, _ in params:
        d_out = w.shape[0]
        flops += 2 * Bp * last * d_out
        trans += Bp * d_out
        last = d_out
    bytes_accessed = (xT.size * 2 + Bp * emb_dim * 4
                      + sum(w.size * 2 + b.size * 4 for w, b in params))

    outT = pl.pallas_call(
        _mlp_kernel,
        out_shape=jax.ShapeDtypeStruct((emb_dim, Bp), jnp.float32),
        grid=(Bp // tile_b,),
        in_specs=in_specs,
        out_specs=out_specs,
        compiler_params=pltpu.CompilerParams(
            dimension_semantics=("parallel",)),
        cost_estimate=pl.CostEstimate(
            flops=int(flops),
            transcendentals=int(trans),
            bytes_accessed=int(bytes_accessed)),
    )(xT, *flat_params)

    # Back to (B, emb) row-major; drop batch padding.
    return outT[:, :B].T


def init_user_embedding_params(key, n_layer, in_dim, embedding_dim):
    """Deterministic init mirroring the PyTorch module (W in (out, in) layout)."""
    params = []
    last_size = in_dim
    hid_dim = in_dim // 2
    for _ in range(n_layer - 1):
        key, kw = jax.random.split(key)
        bound = 1.0 / math.sqrt(last_size)
        w = jax.random.uniform(kw, (hid_dim, last_size), jnp.float32, -bound, bound)
        b = jnp.zeros((hid_dim,), jnp.float32)        # bias.data.fill_(0.0)
        params.append((w, b))
        last_size = hid_dim
    key, kw, kb = jax.random.split(key, 3)
    bound = 1.0 / math.sqrt(last_size)
    w = jax.random.uniform(kw, (embedding_dim, last_size), jnp.float32, -bound, bound)
    b = jax.random.uniform(kb, (embedding_dim,), jnp.float32, -bound, bound)
    params.append((w, b))
    return params


def reference_forward(x, params):
    """Pure-JAX reference with the same bf16-operand / f32-accumulate precision."""
    h = x.astype(jnp.bfloat16).astype(jnp.float32)
    n = len(params)
    for i, (w, b) in enumerate(params):
        w32 = w.astype(jnp.bfloat16).astype(jnp.float32)
        z = h @ w32.T + b.reshape(1, -1)
        a = jax.nn.sigmoid(z)
        h = a.astype(jnp.bfloat16).astype(jnp.float32) if i < n - 1 else a
    return h


if __name__ == "__main__":
    # Small shapes consistent with the module: n_layer=3, in_dim=32 -> hid=16, emb=16.
    n_layer, in_dim, embedding_dim = 3, 32, 16
    batch = 16

    key = jax.random.PRNGKey(0)
    key, kx = jax.random.split(key)
    x = jax.random.normal(kx, (batch, in_dim), jnp.float32)

    params = init_user_embedding_params(key, n_layer, in_dim, embedding_dim)

    out = user_embedding_forward(x, params, tile_b=512)
    out = jax.block_until_ready(out)

    ref = reference_forward(x, params)
    assert out.shape == (batch, embedding_dim)
    err = float(jnp.max(jnp.abs(out - ref)))
    assert jnp.allclose(out, ref, atol=2e-3, rtol=2e-3), err

    print("KERNEL_OK")
</pallas_src>

<mosaic_0001>
module attributes {stable_mosaic.version = 11 : i64} {
  func.func @_mlp_kernel(%arg0: i32, %arg1: memref<32x128xbf16, #tpu.memory_space<vmem>>, %arg2: memref<16x32xbf16, #tpu.memory_space<vmem>>, %arg3: memref<16x1xf32, #tpu.memory_space<vmem>>, %arg4: memref<16x16xbf16, #tpu.memory_space<vmem>>, %arg5: memref<16x1xf32, #tpu.memory_space<vmem>>, %arg6: memref<16x16xbf16, #tpu.memory_space<vmem>>, %arg7: memref<16x1xf32, #tpu.memory_space<vmem>>, %arg8: memref<16x128xf32, #tpu.memory_space<vmem>>) attributes {dimension_semantics = [#tpu.dimension_semantics<parallel>], iteration_bounds = array<i64: 1>, scalar_prefetch = 0 : i64, scratch_operands = 0 : i64, tpu.core_type = #tpu.core_type<tc>, window_params = [{transform_indices = @transform_0, window_bounds = array<i64: 32, 128>}, {pipeline_mode = #tpu.pipeline_mode<synchronous>, transform_indices = @transform_1, window_bounds = array<i64: 16, 32>}, {pipeline_mode = #tpu.pipeline_mode<synchronous>, transform_indices = @transform_2, window_bounds = array<i64: 16, 1>}, {pipeline_mode = #tpu.pipeline_mode<synchronous>, transform_indices = @transform_3, window_bounds = array<i64: 16, 16>}, {pipeline_mode = #tpu.pipeline_mode<synchronous>, transform_indices = @transform_4, window_bounds = array<i64: 16, 1>}, {pipeline_mode = #tpu.pipeline_mode<synchronous>, transform_indices = @transform_5, window_bounds = array<i64: 16, 16>}, {pipeline_mode = #tpu.pipeline_mode<synchronous>, transform_indices = @transform_6, window_bounds = array<i64: 16, 1>}, {transform_indices = @transform_7, window_bounds = array<i64: 16, 128>}]} {
    %c0 = arith.constant 0 : index
    %c0_0 = arith.constant 0 : index
    %0 = vector.load %arg1[%c0, %c0_0] : memref<32x128xbf16, #tpu.memory_space<vmem>>, vector<32x128xbf16>
    %c0_1 = arith.constant 0 : index
    %c0_2 = arith.constant 0 : index
    %1 = vector.load %arg2[%c0_1, %c0_2] : memref<16x32xbf16, #tpu.memory_space<vmem>>, vector<16x32xbf16>
    %c0_3 = arith.constant 0 : index
    %c0_4 = arith.constant 0 : index
    %2 = vector.load %arg3[%c0_3, %c0_4] : memref<16x1xf32, #tpu.memory_space<vmem>>, vector<16x1xf32>
    %cst = arith.constant dense<0.000000e+00> : vector<16x128xf32>
    %3 = tpu.matmul %1, %0, %cst {dimension_numbers = #tpu.dot_dimension_numbers<[1], [0], [0], [1], [0, 0, 1, 1], [], []>} : vector<16x32xbf16>, vector<32x128xbf16>, vector<16x128xf32> -> vector<16x128xf32>
    %4 = vector.broadcast %2 : vector<16x1xf32> to vector<16x128xf32>
    %5 = arith.addf %3, %4 : vector<16x128xf32>
    %6 = arith.negf %5 : vector<16x128xf32>
    %7 = math.exp %6 : vector<16x128xf32>
    %cst_5 = arith.constant 1.000000e+00 : f32
    %8 = vector.broadcast %cst_5 : f32 to vector<16x128xf32>
    %9 = arith.addf %8, %7 : vector<16x128xf32>
    %10 = arith.divf %8, %9 : vector<16x128xf32>
    %11 = arith.truncf %10 : vector<16x128xf32> to vector<16x128xbf16>
    %c0_6 = arith.constant 0 : index
    %c0_7 = arith.constant 0 : index
    %12 = vector.load %arg4[%c0_6, %c0_7] : memref<16x16xbf16, #tpu.memory_space<vmem>>, vector<16x16xbf16>
    %c0_8 = arith.constant 0 : index
    %c0_9 = arith.constant 0 : index
    %13 = vector.load %arg5[%c0_8, %c0_9] : memref<16x1xf32, #tpu.memory_space<vmem>>, vector<16x1xf32>
    %cst_10 = arith.constant dense<0.000000e+00> : vector<16x128xf32>
    %14 = tpu.matmul %12, %11, %cst_10 {dimension_numbers = #tpu.dot_dimension_numbers<[1], [0], [0], [1], [0, 0, 1, 1], [], []>} : vector<16x16xbf16>, vector<16x128xbf16>, vector<16x128xf32> -> vector<16x128xf32>
    %15 = vector.broadcast %13 : vector<16x1xf32> to vector<16x128xf32>
    %16 = arith.addf %14, %15 : vector<16x128xf32>
    %17 = arith.negf %16 : vector<16x128xf32>
    %18 = math.exp %17 : vector<16x128xf32>
    %cst_11 = arith.constant 1.000000e+00 : f32
    %19 = vector.broadcast %cst_11 : f32 to vector<16x128xf32>
    %20 = arith.addf %19, %18 : vector<16x128xf32>
    %21 = arith.divf %19, %20 : vector<16x128xf32>
    %22 = arith.truncf %21 : vector<16x128xf32> to vector<16x128xbf16>
    %c0_12 = arith.constant 0 : index
    %c0_13 = arith.constant 0 : index
    %23 = vector.load %arg6[%c0_12, %c0_13] : memref<16x16xbf16, #tpu.memory_space<vmem>>, vector<16x16xbf16>
    %c0_14 = arith.constant 0 : index
    %c0_15 = arith.constant 0 : index
    %24 = vector.load %arg7[%c0_14, %c0_15] : memref<16x1xf32, #tpu.memory_space<vmem>>, vector<16x1xf32>
    %cst_16 = arith.constant dense<0.000000e+00> : vector<16x128xf32>
    %25 = tpu.matmul %23, %22, %cst_16 {dimension_numbers = #tpu.dot_dimension_numbers<[1], [0], [0], [1], [0, 0, 1, 1], [], []>} : vector<16x16xbf16>, vector<16x128xbf16>, vector<16x128xf32> -> vector<16x128xf32>
    %26 = vector.broadcast %24 : vector<16x1xf32> to vector<16x128xf32>
    %27 = arith.addf %25, %26 : vector<16x128xf32>
    %28 = arith.negf %27 : vector<16x128xf32>
    %29 = math.exp %28 : vector<16x128xf32>
    %cst_17 = arith.constant 1.000000e+00 : f32
    %30 = vector.broadcast %cst_17 : f32 to vector<16x128xf32>
    %31 = arith.addf %30, %29 : vector<16x128xf32>
    %32 = arith.divf %30, %31 : vector<16x128xf32>
    %c0_18 = arith.constant 0 : index
    %c0_19 = arith.constant 0 : index
    %33 = vector.load %arg8[%c0_18, %c0_19] : memref<16x128xf32, #tpu.memory_space<vmem>>, vector<16x128xf32>
    tpu.vector_store %arg8[%c0_18, %c0_19], %32 {strides = array<i32>} : memref<16x128xf32, #tpu.memory_space<vmem>>, vector<16x128xf32>,
    return
  }
  func.func @transform_0(%arg0: i32) -> (i32, i32) {
    %c0_i32 = arith.constant 0 : i32
    %c0_i32_0 = arith.constant 0 : i32
    return %c0_i32, %arg0 : i32, i32
  }
  func.func @transform_1(%arg0: i32) -> (i32, i32) {
    %c0_i32 = arith.constant 0 : i32
    %c0_i32_0 = arith.constant 0 : i32
    %c0_i32_1 = arith.constant 0 : i32
    return %c0_i32, %c0_i32_0 : i32, i32
  }
  func.func @transform_2(%arg0: i32) -> (i32, i32) {
    %c0_i32 = arith.constant 0 : i32
    %c0_i32_0 = arith.constant 0 : i32
    %c0_i32_1 = arith.constant 0 : i32
    return %c0_i32, %c0_i32_0 : i32, i32
  }
  func.func @transform_3(%arg0: i32) -> (i32, i32) {
    %c0_i32 = arith.constant 0 : i32
    %c0_i32_0 = arith.constant 0 : i32
    %c0_i32_1 = arith.constant 0 : i32
    return %c0_i32, %c0_i32_0 : i32, i32
  }
  func.func @transform_4(%arg0: i32) -> (i32, i32) {
    %c0_i32 = arith.constant 0 : i32
    %c0_i32_0 = arith.constant 0 : i32
    %c0_i32_1 = arith.constant 0 : i32
    return %c0_i32, %c0_i32_0 : i32, i32
  }
  func.func @transform_5(%arg0: i32) -> (i32, i32) {
    %c0_i32 = arith.constant 0 : i32
    %c0_i32_0 = arith.constant 0 : i32
    %c0_i32_1 = arith.constant 0 : i32
    return %c0_i32, %c0_i32_0 : i32, i32
  }
  func.func @transform_6(%arg0: i32) -> (i32, i32) {
    %c0_i32 = arith.constant 0 : i32
    %c0_i32_0 = arith.constant 0 : i32
    %c0_i32_1 = arith.constant 0 : i32
    return %c0_i32, %c0_i32_0 : i32, i32
  }
  func.func @transform_7(%arg0: i32) -> (i32, i32) {
    %c0_i32 = arith.constant 0 : i32
    %c0_i32_0 = arith.constant 0 : i32
    return %c0_i32, %arg0 : i32, i32
  }
}

</mosaic_0001>

<bundles_post_ra>
// kernel: tpu_custom_call.1
= control target key start
LH: loop header
LB: loop body
LE: loop exit
PB: predicated region body
PF: predicated region fallthrough
CT: control target
= control target key end

     0   :  { %v393_v1 = vmov 0.0   ;;  %vm394_vm0 = vmmov 0   ;;  %v395_v4 = vmov 0   ;;  %s489_s0 = inlined_call_operand.vmem [shape: bf16[32,128], index: 0, kind: input, shape index: {}]   ;;  %s490_s1 = inlined_call_operand.vmem [shape: bf16[16,32], index: 1, kind: input, shape index: {}]   ;;  %s491_s2 = inlined_call_operand.vmem [shape: f32[16,1], index: 2, kind: input, shape index: {}]   ;;  %s492_s3 = inlined_call_operand.vmem [shape: bf16[16,16], index: 3, kind: input, shape index: {}]   ;;  %s493_s4 = inlined_call_operand.vmem [shape: f32[16,1], index: 4, kind: input, shape index: {}]   ;;  %s494_s5 = inlined_call_operand.vmem [shape: bf16[16,16], index: 5, kind: input, shape index: {}]   ;;  %s495_s6 = inlined_call_operand.vmem [shape: f32[16,1], index: 6, kind: input, shape index: {}]   ;;  %s496_s7 = inlined_call_operand.hbm [shape: f32[16,128], index: 7, kind: output, shape index: {}]  }
   0x1   :  { %v340_v0 = vld [vmem:[%s489_s0] sm:$0xff]   ;;  %312 = vmatprep.subr.bf16.mxu0 %v393_v1  ;;  %320 = vmatprep.subr.bf16.mxu1 %v393_v1  ;;  %v341_v2 = vld [vmem:[%s489_s0 + $0x8] sm:$0xff]  }
   0x2   :  { %313 = vmatpush3.bf16.msra.mxu0 %v340_v0  ;;  %316 = vmatprep.mubr.msk.bf16.mxu0 %vm394_vm0, %v393_v1  ;;  %v34_v3 = vld [vmem:[%s491_s2] sm:$0xff] }
   0x3   :  { %314 = vmatprep.subr.bf16.mxu0 %v393_v1  ;;  %322 = vmatprep.mubr.msk.bf16.mxu1 %vm394_vm0, %v393_v1  ;;  %v342_v5 = vld [vmem:[%s490_s1] sm:$0xff]  }
   0x4   :  { %338 = vset.pattern.permute.xlu0 %v395_v4  ;;  %339 = vset.pattern.permute.xlu1 %v395_v4 }
   0x5   :  { %38 = vperm.xlu0 %338, %v34_v3  }
   0x6   :  { %12 = vsyncpa [#allocation3], 0  ;;  %315 = vmatpush3.bf16.msra.mxu0 %v341_v2  ;;  %vm63_vm1 = vcmask 261120   ;;  %v35_v6 = vld [vmem:[%s491_s2 + $0x8] sm:$0xff]  ;;  %v200_v7 = vld [vmem:[%s495_s6] sm:$0xff]  ;;  %vm140_vm2 = vcmask 130048  }
   0x7   :  { %v123_v8 = vld [vmem:[%s493_s4] sm:$0xff]  ;;  %v124_v9 = vld [vmem:[%s493_s4 + $0x8] sm:$0xff] }
   0x8   :  { %127 = vperm.xlu1 %339, %v123_v8   ;;  %v201_v10 = vld [vmem:[%s495_s6 + $0x8] sm:$0xff]  ;;  %v343_v28 = vld [vmem:[%s492_s3] sm:$0xff]  }
   0x9   :  { %317 = vmatmul.mubr.msk.bf16.vlgmr.msra.gmra.mrb[0].mxu0 %vm63_vm1, %v342_v5  ;;  %43 = vperm.xlu0 %338, %v35_v6   ;;  %v344_v46 = vld [vmem:[%s494_s5] sm:$0xff]   ;;  %s396_s5 = smov [#allocation2]  }
   0xa   :  { %s280_s17 = sshll.u32 %s396_s5, 4  ;;  %s281_s17 = int_to_ptr.vmem [resolvable:$true] %s280_s17 }
   0xb   :  { %s369_s18 = scalar_lea.vmem %s281_s17, 256  ;;  %p374_p1 = scmp.lt.s32.totalorder %s281_s17, %s281_s17 }
   0xc   :  { %132 = vperm.xlu1 %339, %v124_v9   ;;  %p370_p0 = scmp.ne.s32.totalorder %s281_s17, %s369_s18  ;;  %p375_p2 = scmp.lt.s32.totalorder %s369_s18, %s369_s18 }
   0xd   :  { %204 = vperm.xlu0 %338, %v200_v7  }
   0xe   :  { %p376_p3 = por %p375_p2, %p374_p1 }
  0x10   :  { %209 = vperm.xlu1 %339, %v201_v10   ;;  %p377_p4 = pnand %p376_p3, %p370_p0 }
  0x84   :  { %v39_v11 = vpop.permute.xlu0 %38 }
  0x87   :  { %v128_v29 = vpop.permute.xlu1 %127 }
  0x88   :  { %v44_v15 = vpop.permute.xlu0 %43 }
  0x8b   :  { %v133_v33 = vpop.permute.xlu1 %132 }
  0x8c   :  { %v205_v47 = vpop.permute.xlu0 %204 }
  0x8f   :  { %v210_v51 = vpop.permute.xlu1 %209 }
  0xdc   :  { %v101_v12 = vpop.f32.mrb[0].mxu0 }
  0xdd   :  { %v102_v13 = vadd.f32 %v101_v12, %v39_v11  ;;  %v318_v14 = vpop.f32.mrb[1].mxu0 }
  0xde   :  { %v104_v16 = vpop.f32.mrb[2].mxu0 }
  0xdf   :  { %v295_v17 = vmul.f32 -1.442695, %v102_v13  ;;  %v105_v18 = vadd.f32 %v104_v16, %v44_v15  ;;  %v319_v19 = vpop.f32.mrb[3].mxu0 }
  0xe1   :  { %345 = vpow2.f32 %v295_v17  ;;  %v296_v20 = vmul.f32 -1.442695, %v105_v18 }
  0xe3   :  { %347 = vpow2.f32 %v296_v20 }
  0xeb   :  { %v346_v21 = vpop.eup %345 }
  0xec   :  { %v114_v22 = vadd.f32 1.0, %v346_v21 }
  0xed   :  { %v348_v23 = vpop.eup %347 }
  0xee   :  { %v115_v24 = vadd.f32 1.0, %v348_v23  ;;  %349 = vrcp.f32 %v114_v22 }
  0xf0   :  { %351 = vrcp.f32 %v115_v24 }
  0xf8   :  { %v350_v25 = vpop.eup %349 }
  0xfa   :  { %v352_v26 = vpop.eup %351 }
  0xfb   :  { %v120_v27 = vpack.c.bf16 %v352_v26, %v350_v25 }
  0xfd   :  { %321 = vmatpush3.bf16.msra.mxu1 %v120_v27 }
  0xfe   :  { %326 = vmatprep.subr.bf16.mxu1 %v393_v1 }
 0x100   :  { %323 = vmatmul.mubr.msk.bf16.vlgmr.msra.gmra.mrb[0].mxu1 %vm140_vm2, %v343_v28 }
 0x101   :  { %328 = vmatprep.mubr.msk.bf16.mxu1 %vm394_vm0, %v393_v1 }
 0x1d3   :  { %v178_v30 = vpop.f32.mrb[0].mxu1 }
 0x1d4   :  { %v179_v31 = vadd.f32 %v178_v30, %v128_v29  ;;  %v324_v32 = vpop.f32.mrb[1].mxu1 }
 0x1d5   :  { %v181_v34 = vpop.f32.mrb[2].mxu1 }
 0x1d6   :  { %v299_v35 = vmul.f32 -1.442695, %v179_v31  ;;  %v182_v36 = vadd.f32 %v181_v34, %v133_v33  ;;  %v325_v37 = vpop.f32.mrb[3].mxu1 }
 0x1d8   :  { %353 = vpow2.f32 %v299_v35  ;;  %v300_v38 = vmul.f32 -1.442695, %v182_v36 }
 0x1da   :  { %355 = vpow2.f32 %v300_v38 }
 0x1e2   :  { %v354_v39 = vpop.eup %353 }
 0x1e3   :  { %v191_v40 = vadd.f32 1.0, %v354_v39 }
 0x1e4   :  { %v356_v41 = vpop.eup %355 }
 0x1e5   :  { %v192_v42 = vadd.f32 1.0, %v356_v41  ;;  %357 = vrcp.f32 %v191_v40 }
 0x1e7   :  { %359 = vrcp.f32 %v192_v42 }
 0x1ef   :  { %v358_v43 = vpop.eup %357 }
 0x1f1   :  { %v360_v44 = vpop.eup %359 }
 0x1f2   :  { %v197_v45 = vpack.c.bf16 %v360_v44, %v358_v43 }
 0x1f4   :  { %327 = vmatpush3.bf16.msra.mxu1 %v197_v45 }
 0x1f7   :  { %329 = vmatmul.mubr.msk.bf16.vlgmr.msra.gmra.mrb[4].mxu1 %vm140_vm2, %v344_v46 }
 0x2ca   :  { %v254_v48 = vpop.f32.mrb[4].mxu1 }
 0x2cb   :  { %v255_v49 = vadd.f32 %v254_v48, %v205_v47  ;;  %v330_v50 = vpop.f32.mrb[5].mxu1 }
 0x2cc   :  { %v257_v52 = vpop.f32.mrb[6].mxu1 }
 0x2cd   :  { %v303_v53 = vmul.f32 -1.442695, %v255_v49  ;;  %v258_v54 = vadd.f32 %v257_v52, %v210_v51  ;;  %v331_v55 = vpop.f32.mrb[7].mxu1 }
 0x2cf   :  { %361 = vpow2.f32 %v303_v53  ;;  %v304_v56 = vmul.f32 -1.442695, %v258_v54 }
 0x2d1   :  { %363 = vpow2.f32 %v304_v56 }
 0x2d9   :  { %v362_v57 = vpop.eup %361 }
 0x2da   :  { %v267_v58 = vadd.f32 1.0, %v362_v57 }
 0x2db   :  { %v364_v59 = vpop.eup %363 }
 0x2dc   :  { %365 = vrcp.f32 %v267_v58  ;;  %v268_v60 = vadd.f32 1.0, %v364_v59 }
 0x2de   :  { %367 = vrcp.f32 %v268_v60 }
 0x2e6   :  { %v366_v61 = vpop.eup %365 }
 0x2e7   :  { %273 = vst [vmem:[#allocation2] sm:$0xff] %v366_v61 }
 0x2e8   :  { %v368_v62 = vpop.eup %367 }
 0x2e9   :  { %274 = vst [vmem:[#allocation2 + $0x8] sm:$0xff] %v368_v62 }
 0x2ea   :  { %380 = shalt.err (!%p377_p4)
}
 0x2eb   :  { %s381_s21 = scalar_lea.hbm %s496_s7, 256 }
 0x2ec   :  { %p382_p5 = scmp.ne.s32.totalorder %s496_s7, %s381_s21  ;;  %p385_p6 = scmp.lt.u32.totalorder %s381_s21, %s496_s7 }
 0x2ee   :  { %p387_p7 = pnand %p385_p6, %p382_p5 }
 0x2f0   :  { %390 = shalt.err (!%p387_p7)
}
 0x2f1   :  { %s397_s26 = smov 128   ;;  %s398_s27 = smov 8  }
 0x2f2   :  { %286 = dma.vmem_to_hbm [thread:$0]  %s281_s17, 256, %s496_s7, [#allocation3], %s397_s26, %s397_s26, %s398_s27  }
 0x2f3   :  { %391 = dma.done.wait [#allocation3], 256  }
 0x2f4   :  { %392 = vsyncadd [#allocation3], 4294967040 }
 0x2f5   :  { %290 = vsyncpa [#allocation3], 1 }

</bundles_post_ra>
